<compile_context>
chip_gen: v6e
topology: v6e:2x2x1
jax: 0.10.0
libtpu: 0.0.40
codegen_flags: <defaults>
</compile_context>

<pallas_src>
import functools

import jax
import jax.numpy as jnp
from jax import lax
from jax.experimental import pallas as pl
from jax.experimental.pallas import tpu as pltpu

STATE_DIM = 4
STATE_PAD = 8      # state_dim zero-padded to a full sublane group
HIDDEN = 128
HEAD_PAD = 128     # lane-dense fused-head width: [ advantage(A) | value | zeros ]
SUB_ROWS = 256     # in-kernel sub-block (rows) for large batch tiles


def dqn_kernel(x_ref, w1_ref, b1_ref, w2_ref, b2_ref, wh_ref, bh_ref, q_ref,
               *, num_actions, sub_rows, num_sub):
    def compute(row):
        # Hidden layer 1: Linear(4->128 padded to 8->128) + ReLU (f32 accumulate)
        x = x_ref[pl.ds(row, sub_rows), :]                                  # [S, 8] bf16
        h1 = jnp.dot(x, w1_ref[...], preferred_element_type=jnp.float32) + b1_ref[...]
        h1 = jnp.maximum(h1, 0.0)                                           # [S, 128] f32

        # Hidden layer 2: Linear(128, 128) + ReLU
        h2 = jnp.dot(h1.astype(jnp.bfloat16), w2_ref[...],
                     preferred_element_type=jnp.float32) + b2_ref[...]
        h2 = jnp.maximum(h2, 0.0)                                           # [S, 128] f32

        # Fused dueling head: one lane-dense [128, 128] MXU pass.
        #   head[:, 0:A] = advantage, head[:, A] = value, rest zero.
        head = jnp.dot(h2.astype(jnp.bfloat16), wh_ref[...],
                       preferred_element_type=jnp.float32) + bh_ref[...]    # [S, 128] f32

        a = head[:, :num_actions]                                           # [S, A]
        v = head[:, num_actions:num_actions + 1]                            # [S, 1]
        if num_actions == 2:
            # VPU-only combine for the CartPole action space (no XLU reduce).
            a_mean = (head[:, 0:1] + head[:, 1:2]) * 0.5
        else:
            a_mean = jnp.sum(a, axis=1, keepdims=True) * (1.0 / num_actions)

        # Narrow store: only the A action lanes go back to HBM.
        q_ref[pl.ds(row, sub_rows), :] = a + (v - a_mean)

    if num_sub == 1:
        compute(0)
    else:
        def body(s, carry):
            compute(pl.multiple_of(s * sub_rows, sub_rows))
            return carry
        lax.fori_loop(0, num_sub, body, 0, unroll=True)


def prepare_params(params):
    """One-time per-params prep: head fusion, state_dim padding, bf16 casts."""
    A = params["wa"].shape[1]
    assert 1 + A <= HEAD_PAD

    w1 = jnp.zeros((STATE_PAD, HIDDEN), jnp.float32).at[:STATE_DIM, :].set(params["w1"])
    wh = jnp.zeros((HIDDEN, HEAD_PAD), jnp.float32)
    wh = wh.at[:, :A].set(params["wa"]).at[:, A:A + 1].set(params["wv"])
    bh = jnp.zeros((1, HEAD_PAD), jnp.float32)
    bh = bh.at[:, :A].set(params["ba"]).at[:, A:A + 1].set(params["bv"])

    return dict(
        w1=w1.astype(jnp.bfloat16),
        b1=params["b1"],
        w2=params["w2"].astype(jnp.bfloat16),
        b2=params["b2"],
        wh=wh.astype(jnp.bfloat16),
        bh=bh,
        num_actions=A,
    )


def _tiling(batch):
    """(b_tile, sub_rows, num_sub): keep grid >= 2 for B > 256, cap tile at 1024."""
    if batch <= SUB_ROWS:
        bt = max(8, ((batch + 7) // 8) * 8)
        return bt, bt, 1
    half = (batch + 1) // 2
    bt = min(((half + SUB_ROWS - 1) // SUB_ROWS) * SUB_ROWS, 1024)
    return bt, SUB_ROWS, bt // SUB_ROWS


def dqn_forward(x, prep):
    """x: [B, 4] float32. prep: output of prepare_params. Returns q: [B, A] f32."""
    B, state_dim = x.shape
    assert state_dim == STATE_DIM
    A = prep["num_actions"]

    b_tile, sub_rows, num_sub = _tiling(B)
    num_tiles = -(-B // b_tile)
    b_pad = num_tiles * b_tile

    # Pad batch rows to the tile and state_dim to 8 lanes; bf16 for the MXU.
    x_p = jnp.pad(x, ((0, b_pad - B), (0, STATE_PAD - STATE_DIM))).astype(jnp.bfloat16)

    resident = lambda i: (0, 0)   # weights/biases stay VMEM-resident across tiles
    kern = functools.partial(dqn_kernel, num_actions=A,
                             sub_rows=sub_rows, num_sub=num_sub)

    q = pl.pallas_call(
        kern,
        out_shape=jax.ShapeDtypeStruct((b_pad, A), jnp.float32),
        grid=(num_tiles,),
        in_specs=[
            pl.BlockSpec((b_tile, STATE_PAD), lambda i: (i, 0)),   # x tile
            pl.BlockSpec((STATE_PAD, HIDDEN), resident),           # w1 (bf16)
            pl.BlockSpec((1, HIDDEN), resident),                   # b1 (f32)
            pl.BlockSpec((HIDDEN, HIDDEN), resident),              # w2 (bf16)
            pl.BlockSpec((1, HIDDEN), resident),                   # b2 (f32)
            pl.BlockSpec((HIDDEN, HEAD_PAD), resident),            # fused head W (bf16)
            pl.BlockSpec((1, HEAD_PAD), resident),                 # fused head b (f32)
        ],
        out_specs=pl.BlockSpec((b_tile, A), lambda i: (i, 0)),
        compiler_params=pltpu.CompilerParams(
            dimension_semantics=("parallel",)),
    )(x_p, prep["w1"], prep["b1"], prep["w2"], prep["b2"], prep["wh"], prep["bh"])

    return q if b_pad == B else q[:B]


def init_params(key, num_actions):
    """Deterministic init matching PyTorch Linear default (U[-1/sqrt(fan_in), +])."""
    def linear(key, fan_in, fan_out):
        kw, kb = jax.random.split(key)
        bound = 1.0 / jnp.sqrt(float(fan_in))
        w = jax.random.uniform(kw, (fan_in, fan_out), jnp.float32, -bound, bound)
        b = jax.random.uniform(kb, (1, fan_out), jnp.float32, -bound, bound)
        return w, b

    k1, k2, kv, ka = jax.random.split(key, 4)
    w1, b1 = linear(k1, STATE_DIM, HIDDEN)
    w2, b2 = linear(k2, HIDDEN, HIDDEN)
    wv, bv = linear(kv, HIDDEN, 1)
    wa, ba = linear(ka, HIDDEN, num_actions)
    return dict(w1=w1, b1=b1, w2=w2, b2=b2, wv=wv, bv=bv, wa=wa, ba=ba)


def dqn_forward_ref(x, p):
    """Pure-JAX f32 reference of the same forward (for correctness check)."""
    h1 = jnp.maximum(x @ p["w1"] + p["b1"], 0.0)
    h2 = jnp.maximum(h1 @ p["w2"] + p["b2"], 0.0)
    v = h2 @ p["wv"] + p["bv"]
    a = h2 @ p["wa"] + p["ba"]
    return v + (a - jnp.mean(a, axis=1, keepdims=True))


if __name__ == "__main__":
    key = jax.random.PRNGKey(0)
    k_params, k_x1, k_x2, k_x3 = jax.random.split(key, 4)

    num_actions = 2   # CartPole-v1 action space
    params = init_params(k_params, num_actions)
    prep = prepare_params(params)   # head fusion / casts done once, not per call

    # bf16 matmul operands with f32 accumulation -> relaxed tolerances vs f32 ref.
    tol = dict(atol=3e-2, rtol=3e-2)

    # Small per-step rollout batch, replay-buffer batch (grid=2), and a large
    # batch exercising the in-kernel 256-row sub-block loop (b_tile=512, grid=2).
    for kx, B in ((k_x1, 2), (k_x2, 300), (k_x3, 1024)):
        x = jax.random.normal(kx, (B, STATE_DIM), jnp.float32)
        q = jax.block_until_ready(dqn_forward(x, prep))
        q_ref = dqn_forward_ref(x, params)
        assert q.shape == (B, num_actions), (q.shape, B)
        assert jnp.allclose(q, q_ref, **tol), (B, float(jnp.max(jnp.abs(q - q_ref))))

    # TODO(synk): the Pong conv branch (Conv2d stack on [B,4,84,84]) is not
    # implemented here; this script covers the CartPole MLP + dueling head.
    print("KERNEL_OK")
</pallas_src>

<mosaic_0001>
module attributes {stable_mosaic.version = 11 : i64} {
  func.func @dqn_kernel(%arg0: i32, %arg1: memref<8x8xbf16, #tpu.memory_space<vmem>>, %arg2: memref<8x128xbf16, #tpu.memory_space<vmem>>, %arg3: memref<1x128xf32, #tpu.memory_space<vmem>>, %arg4: memref<128x128xbf16, #tpu.memory_space<vmem>>, %arg5: memref<1x128xf32, #tpu.memory_space<vmem>>, %arg6: memref<128x128xbf16, #tpu.memory_space<vmem>>, %arg7: memref<1x128xf32, #tpu.memory_space<vmem>>, %arg8: memref<8x2xf32, #tpu.memory_space<vmem>>) attributes {dimension_semantics = [#tpu.dimension_semantics<parallel>], iteration_bounds = array<i64: 1>, scalar_prefetch = 0 : i64, scratch_operands = 0 : i64, tpu.core_type = #tpu.core_type<tc>, window_params = [{transform_indices = @transform_0, window_bounds = array<i64: 8, 8>}, {pipeline_mode = #tpu.pipeline_mode<synchronous>, transform_indices = @transform_1, window_bounds = array<i64: 8, 128>}, {pipeline_mode = #tpu.pipeline_mode<synchronous>, transform_indices = @transform_2, window_bounds = array<i64: 1, 128>}, {pipeline_mode = #tpu.pipeline_mode<synchronous>, transform_indices = @transform_3, window_bounds = array<i64: 128, 128>}, {pipeline_mode = #tpu.pipeline_mode<synchronous>, transform_indices = @transform_4, window_bounds = array<i64: 1, 128>}, {pipeline_mode = #tpu.pipeline_mode<synchronous>, transform_indices = @transform_5, window_bounds = array<i64: 128, 128>}, {pipeline_mode = #tpu.pipeline_mode<synchronous>, transform_indices = @transform_6, window_bounds = array<i64: 1, 128>}, {transform_indices = @transform_7, window_bounds = array<i64: 8, 2>}]} {
    %c0 = arith.constant 0 : index
    %c0_0 = arith.constant 0 : index
    %0 = vector.load %arg1[%c0, %c0_0] : memref<8x8xbf16, #tpu.memory_space<vmem>>, vector<8x8xbf16>
    %c0_1 = arith.constant 0 : index
    %c0_2 = arith.constant 0 : index
    %1 = vector.load %arg2[%c0_1, %c0_2] : memref<8x128xbf16, #tpu.memory_space<vmem>>, vector<8x128xbf16>
    %cst = arith.constant dense<0.000000e+00> : vector<8x128xf32>
    %2 = tpu.matmul %0, %1, %cst {dimension_numbers = #tpu.dot_dimension_numbers<[1], [0], [0], [1], [0, 0, 1, 1], [], []>} : vector<8x8xbf16>, vector<8x128xbf16>, vector<8x128xf32> -> vector<8x128xf32>
    %c0_3 = arith.constant 0 : index
    %c0_4 = arith.constant 0 : index
    %3 = vector.load %arg3[%c0_3, %c0_4] : memref<1x128xf32, #tpu.memory_space<vmem>>, vector<1x128xf32>
    %4 = vector.broadcast %3 : vector<1x128xf32> to vector<8x128xf32>
    %5 = arith.addf %2, %4 : vector<8x128xf32>
    %cst_5 = arith.constant 0.000000e+00 : f32
    %6 = vector.broadcast %cst_5 : f32 to vector<8x128xf32>
    %7 = arith.maximumf %5, %6 : vector<8x128xf32>
    %8 = arith.truncf %7 : vector<8x128xf32> to vector<8x128xbf16>
    %c0_6 = arith.constant 0 : index
    %c0_7 = arith.constant 0 : index
    %9 = vector.load %arg4[%c0_6, %c0_7] : memref<128x128xbf16, #tpu.memory_space<vmem>>, vector<128x128xbf16>
    %cst_8 = arith.constant dense<0.000000e+00> : vector<8x128xf32>
    %10 = tpu.matmul %8, %9, %cst_8 {dimension_numbers = #tpu.dot_dimension_numbers<[1], [0], [0], [1], [0, 0, 1, 1], [], []>} : vector<8x128xbf16>, vector<128x128xbf16>, vector<8x128xf32> -> vector<8x128xf32>
    %c0_9 = arith.constant 0 : index
    %c0_10 = arith.constant 0 : index
    %11 = vector.load %arg5[%c0_9, %c0_10] : memref<1x128xf32, #tpu.memory_space<vmem>>, vector<1x128xf32>
    %12 = vector.broadcast %11 : vector<1x128xf32> to vector<8x128xf32>
    %13 = arith.addf %10, %12 : vector<8x128xf32>
    %cst_11 = arith.constant 0.000000e+00 : f32
    %14 = vector.broadcast %cst_11 : f32 to vector<8x128xf32>
    %15 = arith.maximumf %13, %14 : vector<8x128xf32>
    %16 = arith.truncf %15 : vector<8x128xf32> to vector<8x128xbf16>
    %c0_12 = arith.constant 0 : index
    %c0_13 = arith.constant 0 : index
    %17 = vector.load %arg6[%c0_12, %c0_13] : memref<128x128xbf16, #tpu.memory_space<vmem>>, vector<128x128xbf16>
    %cst_14 = arith.constant dense<0.000000e+00> : vector<8x128xf32>
    %18 = tpu.matmul %16, %17, %cst_14 {dimension_numbers = #tpu.dot_dimension_numbers<[1], [0], [0], [1], [0, 0, 1, 1], [], []>} : vector<8x128xbf16>, vector<128x128xbf16>, vector<8x128xf32> -> vector<8x128xf32>
    %c0_15 = arith.constant 0 : index
    %c0_16 = arith.constant 0 : index
    %19 = vector.load %arg7[%c0_15, %c0_16] : memref<1x128xf32, #tpu.memory_space<vmem>>, vector<1x128xf32>
    %20 = vector.broadcast %19 : vector<1x128xf32> to vector<8x128xf32>
    %21 = arith.addf %18, %20 : vector<8x128xf32>
    %22 = vector.extract_strided_slice %21 {offsets = [0, 0], sizes = [8, 2], strides = [1, 1]} : vector<8x128xf32> to vector<8x2xf32>
    %23 = vector.extract_strided_slice %21 {offsets = [0, 2], sizes = [8, 1], strides = [1, 1]} : vector<8x128xf32> to vector<8x1xf32>
    %24 = vector.extract_strided_slice %21 {offsets = [0, 0], sizes = [8, 1], strides = [1, 1]} : vector<8x128xf32> to vector<8x1xf32>
    %25 = vector.extract_strided_slice %21 {offsets = [0, 1], sizes = [8, 1], strides = [1, 1]} : vector<8x128xf32> to vector<8x1xf32>
    %26 = arith.addf %24, %25 : vector<8x1xf32>
    %cst_17 = arith.constant 5.000000e-01 : f32
    %27 = vector.broadcast %cst_17 : f32 to vector<8x1xf32>
    %28 = arith.mulf %26, %27 : vector<8x1xf32>
    %29 = arith.subf %23, %28 : vector<8x1xf32>
    %30 = vector.broadcast %29 : vector<8x1xf32> to vector<8x2xf32>
    %31 = arith.addf %22, %30 : vector<8x2xf32>
    %c0_18 = arith.constant 0 : index
    %c0_19 = arith.constant 0 : index
    %32 = vector.load %arg8[%c0_18, %c0_19] : memref<8x2xf32, #tpu.memory_space<vmem>>, vector<8x2xf32>
    tpu.vector_store %arg8[%c0_18, %c0_19], %31 {strides = array<i32>} : memref<8x2xf32, #tpu.memory_space<vmem>>, vector<8x2xf32>,
    return
  }
  func.func @transform_0(%arg0: i32) -> (i32, i32) {
    %c0_i32 = arith.constant 0 : i32
    %c0_i32_0 = arith.constant 0 : i32
    return %arg0, %c0_i32 : i32, i32
  }
  func.func @transform_1(%arg0: i32) -> (i32, i32) {
    %c0_i32 = arith.constant 0 : i32
    %c0_i32_0 = arith.constant 0 : i32
    %c0_i32_1 = arith.constant 0 : i32
    return %c0_i32, %c0_i32_0 : i32, i32
  }
  func.func @transform_2(%arg0: i32) -> (i32, i32) {
    %c0_i32 = arith.constant 0 : i32
    %c0_i32_0 = arith.constant 0 : i32
    %c0_i32_1 = arith.constant 0 : i32
    return %c0_i32, %c0_i32_0 : i32, i32
  }
  func.func @transform_3(%arg0: i32) -> (i32, i32) {
    %c0_i32 = arith.constant 0 : i32
    %c0_i32_0 = arith.constant 0 : i32
    %c0_i32_1 = arith.constant 0 : i32
    return %c0_i32, %c0_i32_0 : i32, i32
  }
  func.func @transform_4(%arg0: i32) -> (i32, i32) {
    %c0_i32 = arith.constant 0 : i32
    %c0_i32_0 = arith.constant 0 : i32
    %c0_i32_1 = arith.constant 0 : i32
    return %c0_i32, %c0_i32_0 : i32, i32
  }
  func.func @transform_5(%arg0: i32) -> (i32, i32) {
    %c0_i32 = arith.constant 0 : i32
    %c0_i32_0 = arith.constant 0 : i32
    %c0_i32_1 = arith.constant 0 : i32
    return %c0_i32, %c0_i32_0 : i32, i32
  }
  func.func @transform_6(%arg0: i32) -> (i32, i32) {
    %c0_i32 = arith.constant 0 : i32
    %c0_i32_0 = arith.constant 0 : i32
    %c0_i32_1 = arith.constant 0 : i32
    return %c0_i32, %c0_i32_0 : i32, i32
  }
  func.func @transform_7(%arg0: i32) -> (i32, i32) {
    %c0_i32 = arith.constant 0 : i32
    %c0_i32_0 = arith.constant 0 : i32
    return %arg0, %c0_i32 : i32, i32
  }
}

</mosaic_0001>

<bundles_post_ra>
// kernel: tpu_custom_call.1
= control target key start
LH: loop header
LB: loop body
LE: loop exit
PB: predicated region body
PF: predicated region fallthrough
CT: control target
= control target key end

     0   :  { %12 = vsyncpa [#allocation3], 0  ;;  %s686_s0 = inlined_call_operand.hbm [shape: bf16[8,8], index: 0, kind: input, shape index: {}]   ;;  %s687_s1 = inlined_call_operand.hbm [shape: bf16[8,128], index: 1, kind: input, shape index: {}]   ;;  %s688_s2 = inlined_call_operand.vmem [shape: f32[1,128], index: 2, kind: input, shape index: {}]   ;;  %s689_s3 = inlined_call_operand.hbm [shape: bf16[128,128], index: 3, kind: input, shape index: {}]   ;;  %s690_s4 = inlined_call_operand.vmem [shape: f32[1,128], index: 4, kind: input, shape index: {}]   ;;  %s691_s5 = inlined_call_operand.hbm [shape: bf16[128,128], index: 5, kind: input, shape index: {}]   ;;  %s692_s6 = inlined_call_operand.vmem [shape: f32[1,128], index: 6, kind: input, shape index: {}]   ;;  %s693_s7 = inlined_call_operand.vmem [shape: f32[8,2], index: 7, kind: output, shape index: {}]  }
   0x1   :  { %13 = vsyncpa [#allocation5], 0 }
   0x2   :  { %14 = vsyncpa [#allocation8], 0  ;;  %s588_s24 = smov [#allocation4]   ;;  %s589_s26 = smov [#allocation2]  }
   0x3   :  { %s31_s25 = sshll.u32 %s588_s24, 4  ;;  %s21_s27 = sshll.u32 %s589_s26, 4  ;;  %s32_s25 = int_to_ptr.vmem [resolvable:$true] %s31_s25  ;;  %s22_s27 = int_to_ptr.vmem [resolvable:$true] %s21_s27 }
   0x4   :  { %s510_s28 = scalar_lea.vmem %s32_s25, 64  ;;  %p515_p1 = scmp.lt.s32.totalorder %s32_s25, %s32_s25 }
   0x5   :  { %p511_p0 = scmp.ne.s32.totalorder %s32_s25, %s510_s28  ;;  %p516_p2 = scmp.lt.s32.totalorder %s510_s28, %s510_s28 }
   0x7   :  { %p517_p3 = por %p516_p2, %p515_p1 }
   0x9   :  { %p518_p4 = pnand %p517_p3, %p511_p0 }
   0xb   :  { %521 = shalt.err (!%p518_p4)
}
   0xc   :  { %34 = dma.hbm_to_vmem [thread:$0]  %s687_s1, 64, %s32_s25, [#allocation5]  }
   0xd   :  { %s530_s8 = scalar_lea.vmem %s22_s27, 64  ;;  %p535_p6 = scmp.lt.s32.totalorder %s22_s27, %s22_s27 }
   0xe   :  { %p531_p5 = scmp.ne.s32.totalorder %s22_s27, %s530_s8  ;;  %p536_p7 = scmp.lt.s32.totalorder %s530_s8, %s530_s8 }
  0x10   :  { %p537_p8 = por %p536_p7, %p535_p6 }
  0x12   :  { %p538_p9 = pnand %p537_p8, %p531_p5 }
  0x14   :  { %541 = shalt.err (!%p538_p9)
}
  0x15   :  { %24 = dma.hbm_to_vmem [thread:$0]  %s686_s0, 64, %s22_s27, [#allocation3]  }
  0x16   :  { %s590_s11 = smov [#allocation6]  }
  0x17   :  { %s42_s12 = sshll.u32 %s590_s11, 4  ;;  %s43_s12 = int_to_ptr.vmem [resolvable:$true] %s42_s12 }
  0x18   :  { %s550_s13 = scalar_lea.vmem %s43_s12, 1024  ;;  %p555_p11 = scmp.lt.s32.totalorder %s43_s12, %s43_s12 }
  0x19   :  { %p551_p10 = scmp.ne.s32.totalorder %s43_s12, %s550_s13  ;;  %p556_p12 = scmp.lt.s32.totalorder %s550_s13, %s550_s13 }
  0x1b   :  { %p557_p13 = por %p556_p12, %p555_p11 }
  0x1d   :  { %p558_p0 = pnand %p557_p13, %p551_p10 }
  0x1f   :  { %561 = shalt.err (!%p558_p0)
}
  0x20   :  { %s591_s1 = smov 64   ;;  %s592_s14 = smov 4  }
  0x21   :  { %48 = dma.hbm_to_vmem [thread:$0]  %s689_s3, 1024, %s43_s12, [#allocation5], %s591_s1, %s591_s1, %s592_s14  }
  0x22   :  { %s593_s17 = smov [#allocation7]  }
  0x23   :  { %s56_s18 = sshll.u32 %s593_s17, 4  ;;  %s57_s18 = int_to_ptr.vmem [resolvable:$true] %s56_s18 }
  0x24   :  { %s570_s0 = scalar_lea.vmem %s57_s18, 1024  ;;  %p575_p2 = scmp.lt.s32.totalorder %s57_s18, %s57_s18 }
  0x25   :  { %p571_p1 = scmp.ne.s32.totalorder %s57_s18, %s570_s0  ;;  %p576_p3 = scmp.lt.s32.totalorder %s570_s0, %s570_s0 }
  0x27   :  { %p577_p4 = por %p576_p3, %p575_p2 }
  0x29   :  { %p578_p5 = pnand %p577_p4, %p571_p1 }
  0x2b   :  { %581 = shalt.err (!%p578_p5)
}
  0x2c   :  { %62 = dma.hbm_to_vmem [thread:$0]  %s691_s5, 1024, %s57_s18, [#allocation8], %s591_s1, %s591_s1, %s592_s14  }
  0x2d   :  { %582 = dma.done.wait [#allocation3], 64  }
  0x2e   :  { %583 = vsyncadd [#allocation3], 4294967232 }
  0x2f   :  { %584 = dma.done.wait [#allocation5], 1088  }
  0x30   :  { %585 = vsyncadd [#allocation5], 4294966208 }
  0x31   :  { %586 = dma.done.wait [#allocation8], 1024  }
  0x32   :  { %587 = vsyncadd [#allocation8], 4294966272  ;;  %v594_v0 = vmov 0.0   ;;  %vm595_vm0 = vmmov 0   ;;  %vm91_vm1 = vcmask 1043456   ;;  %vm87_vm2 = vcmask 64512  }
  0x33   :  { %427 = vmatprep.subr.bf16.mxu0 %v594_v0  ;;  %429 = vmatprep.mubr.msk.bf16.mxu0 %vm595_vm0, %v594_v0  ;;  %v79_v1 = vld [vmem:[#allocation4] sm:$0xf]  ;;  %v78_v4 = vld [vmem:[#allocation2] sm:$0xf]  ;;  %v487_v5 = vld [vmem:[#allocation6 + $0x30] sm:$0xff]   ;;  %s596_s24 = smov 127  }
  0x34   :  { %433 = vmatprep.subr.bf16.mxu1 %v594_v0  ;;  %449 = vmatprep.mubr.msk.bf16.mxu1 %vm595_vm0, %v594_v0  ;;  %v93_v2 = vsel %vm91_vm1, %v79_v1, 0  ;;  %v486_v3 = vld [vmem:[#allocation6 + $0x38] sm:$0xff]   ;;  %v488_v6 = vld [vmem:[#allocation6 + $0x28] sm:$0xff]   ;;  %v489_v7 = vld [vmem:[#allocation6 + $0x20] sm:$0xff]   ;;  %v597_v42 = vmov 2   ;;  %vm378_vm3 = vcmask 15360  }
  0x35   :  { %428 = vmatpush3.bf16.msra.mxu0 %v93_v2  ;;  %434 = vmatpush3.bf16.msra.mxu1 %v486_v3  ;;  %v490_v8 = vld [vmem:[#allocation6 + $0x18] sm:$0xff]   ;;  %v491_v9 = vld [vmem:[#allocation6 + $0x10] sm:$0xff]   ;;  %v492_v10 = vld [vmem:[#allocation6 + $0x8] sm:$0xff]  }
  0x36   :  { %453 = vmatprep.subr.bf16.mxu0 %v594_v0  ;;  %435 = vmatprep.subr.bf16.mxu1 %v594_v0  ;;  %v493_v11 = vld [vmem:[#allocation6] sm:$0xff]   ;;  %v494_v12 = vld [vmem:[#allocation7 + $0x38] sm:$0xff]   ;;  %v495_v13 = vld [vmem:[#allocation7 + $0x30] sm:$0xff]  }
  0x37   :  { %v496_v14 = vld [vmem:[#allocation7 + $0x28] sm:$0xff]   ;;  %v497_v15 = vld [vmem:[#allocation7 + $0x20] sm:$0xff]   ;;  %v498_v16 = vld [vmem:[#allocation7 + $0x18] sm:$0xff]   ;;  %484 = vset.pattern.permute.xlu1 %v597_v42  ;;  %485 = vset.pattern.permute.xlu0 %v597_v42 }
  0x38   :  { %430 = vmatmul.mubr.msk.bf16.vlgmr.msra.gmra.mxu0 %vm87_vm2, %v78_v4  ;;  %v499_v17 = vld [vmem:[#allocation7 + $0x10] sm:$0xff]   ;;  %v387_v18 = vld [vmem:[%s688_s2] ss:$0 sm:$0xff]  ;;  %v500_v26 = vld [vmem:[#allocation7 + $0x8] sm:$0xff]  }
  0x39   :  { %469 = vmatprep.mubr.msk.bf16.mxu0 %vm595_vm0, %v594_v0  ;;  %436 = vmatpush3.bf16.msra.mxu1 %v487_v5  ;;  %v501_v27 = vld [vmem:[#allocation7] sm:$0xff]   ;;  %v389_v28 = vld [vmem:[%s690_s4] ss:$0 sm:$0xff]  ;;  %s598_s4 = smov 2  }
  0x3a   :  { %437 = vmatprep.subr.bf16.mxu1 %v594_v0  ;;  %454 = vmatpush3.bf16.msra.mxu0 %v494_v12  ;;  %v398_v36 = vld [vmem:[%s692_s6] ss:$0 sm:$0xff] }
  0x3b   :  { %455 = vmatprep.subr.bf16.mxu0 %v594_v0 }
  0x3d   :  { %438 = vmatpush3.bf16.msra.mxu1 %v488_v6 }
  0x3e   :  { %439 = vmatprep.subr.bf16.mxu1 %v594_v0  ;;  %456 = vmatpush3.bf16.msra.mxu0 %v495_v13 }
  0x3f   :  { %457 = vmatprep.subr.bf16.mxu0 %v594_v0 }
  0x41   :  { %440 = vmatpush3.bf16.msra.mxu1 %v489_v7 }
  0x42   :  { %441 = vmatprep.subr.bf16.mxu1 %v594_v0  ;;  %458 = vmatpush3.bf16.msra.mxu0 %v496_v14 }
  0x43   :  { %459 = vmatprep.subr.bf16.mxu0 %v594_v0 }
  0x45   :  { %442 = vmatpush3.bf16.msra.mxu1 %v490_v8 }
  0x46   :  { %443 = vmatprep.subr.bf16.mxu1 %v594_v0  ;;  %460 = vmatpush3.bf16.msra.mxu0 %v497_v15 }
  0x47   :  { %461 = vmatprep.subr.bf16.mxu0 %v594_v0 }
  0x49   :  { %444 = vmatpush3.bf16.msra.mxu1 %v491_v9 }
  0x4a   :  { %445 = vmatprep.subr.bf16.mxu1 %v594_v0  ;;  %462 = vmatpush3.bf16.msra.mxu0 %v498_v16 }
  0x4b   :  { %463 = vmatprep.subr.bf16.mxu0 %v594_v0 }
  0x4d   :  { %446 = vmatpush3.bf16.msra.mxu1 %v492_v10 }
  0x4e   :  { %447 = vmatprep.subr.bf16.mxu1 %v594_v0  ;;  %464 = vmatpush3.bf16.msra.mxu0 %v499_v17 }
  0x4f   :  { %465 = vmatprep.subr.bf16.mxu0 %v594_v0 }
  0x51   :  { %448 = vmatpush3.bf16.msra.mxu1 %v493_v11 }
  0x52   :  { %466 = vmatpush3.bf16.msra.mxu0 %v500_v26 }
  0x53   :  { %467 = vmatprep.subr.bf16.mxu0 %v594_v0 }
  0x56   :  { %468 = vmatpush3.bf16.msra.mxu0 %v501_v27 }
  0xf8   :  { %v129_v19 = vpop.f32.mrf.mxu0 }
  0xf9   :  { %v130_v20 = vadd.f32 %v387_v18, %v129_v19 }
  0xfa   :  { %v431_v21 = vpop.f32.mrf.mxu0 }
  0xfb   :  { %v135_v22 = vmax.f32 %v130_v20, 0.0 }
  0xfc   :  { %v132_v23 = vpop.f32.mrf.mxu0 }
  0xfd   :  { %v136_v24 = vpack.c.bf16 %v135_v22, %v135_v22 }
  0xfe   :  { %v432_v25 = vpop.f32.mrf.mxu0 }
  0xff   :  { %450 = vmatmul.mubr.bf16.vlgmr.msra.gmra.mxu1 %v136_v24 }
 0x1bf   :  { %v242_v29 = vpop.f32.mrf.mxu1 }
 0x1c0   :  { %v243_v30 = vadd.f32 %v389_v28, %v242_v29 }
 0x1c1   :  { %v451_v31 = vpop.f32.mrf.mxu1 }
 0x1c2   :  { %v248_v32 = vmax.f32 %v243_v30, 0.0 }
 0x1c3   :  { %v245_v33 = vpop.f32.mrf.mxu1 }
 0x1c4   :  { %v249_v34 = vpack.c.bf16 %v248_v32, %v248_v32 }
 0x1c5   :  { %v452_v35 = vpop.f32.mrf.mxu1 }
 0x1c6   :  { %470 = vmatmul.mubr.bf16.vlgmr.msra.gmra.mxu0 %v249_v34 }
 0x286   :  { %v355_v37 = vpop.f32.mrf.mxu0 }
 0x287   :  { %v356_v38 = vadd.f32 %v398_v36, %v355_v37 }
 0x288   :  { %v471_v39 = vpop.f32.mrf.mxu0 }
 0x289   :  { %362 = vrot.lane.b32.xlu0 %v356_v38, %s596_s24 }
 0x28a   :  { %v358_v40 = vpop.f32.mrf.mxu0 }
 0x28c   :  { %v472_v41 = vpop.f32.mrf.mxu0 }
 0x2fb   :  { %v363_v43 = vpop.permute.xlu0 %362 }
 0x2fc   :  { %v365_v44 = vadd.f32 %v363_v43, %v356_v38 }
 0x2fe   :  { %v366_v45 = vmul.f32 0.5, %v365_v44 }
 0x300   :  { %368 = vrot.lane.b32.xlu0 %v366_v45, %s598_s4 }
 0x372   :  { %v369_v46 = vpop.permute.xlu0 %368 }
 0x373   :  { %v371_v47 = vsub.f32 %v356_v38, %v369_v46 }
 0x375   :  { %374 = vperm.xlu1 %484, %v371_v47  }
 0x3f0   :  { %v375_v48 = vpop.permute.xlu1 %374 }
 0x3f1   :  { %v377_v49 = vadd.f32 %v375_v48, %v356_v38 }
 0x3f3   :  { %379 = vst.msk [vmem:[%s693_s7] sm:$0xff] %vm378_vm3, %v377_v49 }
 0x3f4   :  { %384 = vsyncpa [#allocation3], 1 }
 0x3f5   :  { %385 = vsyncpa [#allocation5], 1 }
 0x3f6   :  { %386 = vsyncpa [#allocation8], 1 }

</bundles_post_ra>
